<compile_context>
chip_gen: v6e
topology: v6e:2x2x1
jax: 0.10.0
libtpu: 0.0.40
codegen_flags: <defaults>
</compile_context>

<pallas_src>
import functools

import jax
import jax.numpy as jnp
from jax.experimental import pallas as pl
from jax.experimental.pallas import tpu as pltpu


# ---------------------------------------------------------------------------
# Generation-aware tiling heuristics
# ---------------------------------------------------------------------------
def _vmem_capacity_bytes() -> int:
    """Physical VMEM per core (128 MiB on v5e/v6e, 64 MiB on v7x)."""
    try:
        cap = getattr(pltpu.get_tpu_info(), "vmem_capacity_bytes", None)
        if cap:
            return int(cap)
    except Exception:
        pass
    return 128 << 20  # conservative default


def _round_up(x: int, m: int) -> int:
    return (x + m - 1) // m * m


def _choose_tiles(b: int, n: int, itemsize: int, per_array_budget: int):
    """Pick (row, lane) tile sizes for a (B, N) slab.

    * lanes (tn): multiple of 128, sized so one input tile ~= per_array_budget
      bytes; prefers a tn that exactly divides n when n is 128-aligned so the
      tail mask vanishes from codegen.
    * rows (tb): sublane unit (8 f32 / 16 bf16) by default; grown in row-unit
      multiples up to the byte budget when a single lane tile already covers
      the whole sample (small-N shapes); capped so the batch ('parallel') grid
      axis keeps >= 2 blocks whenever the batch allows (v7x megacore).
    """
    row_unit = 8 if itemsize >= 4 else (16 if itemsize == 2 else 32)
    n_lanes = _round_up(max(n, 1), 128)

    tb = min(b, row_unit)
    if b >= 2 * row_unit:
        # Keep >= 2 sublane-aligned batch blocks so both v7x TensorCores work.
        tb_cap = max(row_unit, (b - 1) // row_unit * row_unit)
    else:
        # TODO(synk): B < 2*row_unit leaves a single batch block; on v7x one
        # TensorCore idles. Splitting N across cores needs a partial-sum
        # combine and is not worth it for this memory-bound loss.
        tb_cap = b
    tb = min(tb, tb_cap)

    tn_cap = max(128, per_array_budget // (max(tb, 1) * itemsize) // 128 * 128)
    tn = min(n_lanes, tn_cap)

    # Prefer an exactly-dividing lane tile for 128-aligned N (common CHW
    # products): no tail mask, no wasted padded-lane DMA on the last tile.
    if n % 128 == 0 and 0 < tn < n:
        cand = tn
        while cand >= 128 and n % cand != 0:
            cand -= 128
        if cand >= 128 and cand * 4 >= tn * 3:  # accept <= ~33% more steps
            tn = cand

    # Small-N shapes: one lane tile covers the whole sample -> fill the byte
    # budget with more rows instead of running tiny grid steps.
    if tn >= n_lanes and tb < b:
        max_rows = per_array_budget // max(tn * itemsize, 1)
        new_tb = min(tb_cap, max(tb, max_rows))
        if new_tb < b:
            new_tb = max(tb, new_tb // row_unit * row_unit)
        tb = min(new_tb, tb_cap)

    return tb, tn


def _plan(b: int, n: int, itemsize: int, num_buffered_arrays: int):
    """Tile sizes + VMEM capacity for this TPU generation."""
    vmem_cap = _vmem_capacity_bytes()
    # Target total double-buffered footprint: ~1/3 of physical VMEM, capped at
    # 32 MiB (safe on v7x's 64 MiB), floored at 12 MiB. Per-array tiles cap at
    # 4 MiB (amortizes the ~0.35us per-grid-step cost to <10% even at v7x's
    # 3.2 TB/s) and floor at 1 MiB.
    total_budget = max(12 << 20, min(32 << 20, vmem_cap // 3))
    per_array = min(4 << 20, total_budget // (2 * num_buffered_arrays))
    per_array = max(per_array, 1 << 20)
    tb, tn = _choose_tiles(b, n, itemsize, per_array)
    return tb, tn, vmem_cap


def _vmem_limit(vmem_cap: int, num_buffered_arrays: int, tb: int, tn: int,
                itemsize: int) -> int:
    footprint = 2 * num_buffered_arrays * tb * tn * itemsize
    # Always >= the default scoped limit, covers the double-buffered tiles plus
    # headroom for Mosaic-internal scratch, never above 3/4 of physical VMEM.
    return int(min(vmem_cap * 3 // 4, max(32 << 20, footprint + (16 << 20))))


# ---------------------------------------------------------------------------
# Kernels
# ---------------------------------------------------------------------------
def _l1_reduce_kernel(x_ref, y_ref, o_ref, *, n_total, tn, inv_n, do_mean,
                      mask_tail):
    # x_ref/y_ref: (TB, TN) tile; o_ref: (TB, 1) f32, resident across the
    # reduction (k) grid axis -> acts as the per-row accumulator.
    k = pl.program_id(1)
    nk = pl.num_programs(1)

    @pl.when(k == 0)
    def _():
        o_ref[...] = jnp.zeros_like(o_ref)

    # Elementwise work in the native dtype (bf16-native on v6e/v7x);
    # upcast only for the accumulation.
    diff = jnp.abs(x_ref[...] - y_ref[...]).astype(jnp.float32)

    if mask_tail:
        # Only the last N-tile can be partial; keep all earlier tiles on the
        # plain unmasked sum (no iota/compare/select on the hot path).
        @pl.when(k < nk - 1)
        def _():
            o_ref[...] += jnp.sum(diff, axis=-1, keepdims=True)

        @pl.when(k == nk - 1)
        def _():
            rem = n_total - k * tn
            col = jax.lax.broadcasted_iota(jnp.int32, diff.shape, dimension=1)
            masked = jnp.where(col < rem, diff, 0.0)
            o_ref[...] += jnp.sum(masked, axis=-1, keepdims=True)
    else:
        o_ref[...] += jnp.sum(diff, axis=-1, keepdims=True)

    if do_mean:
        @pl.when(k == nk - 1)
        def _():
            o_ref[...] = o_ref[...] * inv_n


def _l1_elementwise_kernel(x_ref, y_ref, o_ref):
    # reduction='none': per-element |x - y| in the input dtype.
    o_ref[...] = jnp.abs(x_ref[...] - y_ref[...]).astype(o_ref.dtype)


# ---------------------------------------------------------------------------
# Wrapper
# ---------------------------------------------------------------------------
def batch_l1_loss(inp: jax.Array, tgt: jax.Array, reduction: str = "mean",
                  *, tile_rows: int | None = None,
                  tile_cols: int | None = None) -> jax.Array:
    if reduction not in ("none", "mean", "sum"):
        raise ValueError(f"Unknown reduction mode: {reduction}")
    assert inp.shape == tgt.shape, "input/target must have identical shapes"

    b = inp.shape[0]
    n = 1
    for d in inp.shape[1:]:
        n *= d
    itemsize = jnp.dtype(inp.dtype).itemsize

    # Reduce path double-buffers 2 input arrays; 'none' adds the output tile.
    num_arrays = 3 if reduction == "none" else 2
    tb, tn, vmem_cap = _plan(b, n, itemsize, num_arrays)
    if tile_rows is not None:
        tb = tile_rows
    if tile_cols is not None:
        tn = tile_cols
    grid = (pl.cdiv(b, tb), pl.cdiv(n, tn))
    vmem_limit = _vmem_limit(vmem_cap, num_arrays, tb, tn, itemsize)

    # Glue: flatten per-sample elements to a lane-dense last dim.
    x2 = inp.reshape(b, n)
    y2 = tgt.reshape(b, n)

    if reduction == "none":
        out = pl.pallas_call(
            _l1_elementwise_kernel,
            out_shape=jax.ShapeDtypeStruct((b, n), inp.dtype),
            grid_spec=pltpu.PrefetchScalarGridSpec(
                num_scalar_prefetch=0,
                grid=grid,
                in_specs=[
                    pl.BlockSpec((tb, tn), lambda i, j: (i, j)),
                    pl.BlockSpec((tb, tn), lambda i, j: (i, j)),
                ],
                out_specs=pl.BlockSpec((tb, tn), lambda i, j: (i, j)),
            ),
            compiler_params=pltpu.CompilerParams(
                dimension_semantics=("parallel", "parallel"),
                vmem_limit_bytes=vmem_limit),
            cost_estimate=pl.CostEstimate(
                flops=2 * b * n,
                transcendentals=0,
                bytes_accessed=3 * b * n * itemsize),
        )(x2, y2)
        return out.reshape(inp.shape)

    do_mean = reduction == "mean"
    kernel = functools.partial(
        _l1_reduce_kernel,
        n_total=n,
        tn=tn,
        inv_n=float(1.0 / max(n, 1)),
        do_mean=do_mean,
        mask_tail=(n % tn) != 0,
    )
    out = pl.pallas_call(
        kernel,
        out_shape=jax.ShapeDtypeStruct((b, 1), jnp.float32),
        grid_spec=pltpu.PrefetchScalarGridSpec(
            num_scalar_prefetch=0,
            grid=grid,
            in_specs=[
                pl.BlockSpec((tb, tn), lambda i, k: (i, k)),
                pl.BlockSpec((tb, tn), lambda i, k: (i, k)),
            ],
            # Output block revisited across k -> stays resident in VMEM and
            # serves as the f32 accumulator; written back once per batch tile.
            out_specs=pl.BlockSpec((tb, 1), lambda i, k: (i, 0)),
        ),
        compiler_params=pltpu.CompilerParams(
            dimension_semantics=("parallel", "arbitrary"),
            vmem_limit_bytes=vmem_limit),
        cost_estimate=pl.CostEstimate(
            flops=2 * b * n,
            transcendentals=0,
            bytes_accessed=2 * b * n * itemsize + b * 4),
    )(x2, y2)
    # vmap over batch of a scalar loss -> shape (B,)
    return out.reshape(b).astype(inp.dtype)


# ---------------------------------------------------------------------------
# Demo / self-check
# ---------------------------------------------------------------------------
if __name__ == "__main__":
    key = jax.random.PRNGKey(0)
    k1, k2, k3, k4 = jax.random.split(key, 4)

    # --- Test 1: small NCHW, f32, all reductions ---------------------------
    B, C, H, W = 2, 4, 16, 16
    x = jax.random.normal(k1, (B, C, H, W), dtype=jnp.float32)
    y = jax.random.normal(k2, (B, C, H, W), dtype=jnp.float32)

    out_mean = jax.block_until_ready(batch_l1_loss(x, y, reduction="mean"))
    out_sum = jax.block_until_ready(batch_l1_loss(x, y, reduction="sum"))
    out_none = jax.block_until_ready(batch_l1_loss(x, y, reduction="none"))

    ref_none = jnp.abs(x - y)
    ref_mean = jnp.mean(ref_none, axis=(1, 2, 3))
    ref_sum = jnp.sum(ref_none, axis=(1, 2, 3))

    assert out_mean.shape == (B,)
    assert out_sum.shape == (B,)
    assert out_none.shape == (B, C, H, W)
    assert jnp.allclose(out_mean, ref_mean, rtol=1e-5, atol=1e-5)
    assert jnp.allclose(out_sum, ref_sum, rtol=1e-4, atol=1e-4)
    assert jnp.allclose(out_none, ref_none, rtol=1e-6, atol=1e-6)

    # --- Test 2: multi-row tiles, tiled reduction axis, lane-tail masking --
    B2, C2, H2, W2 = 16, 3, 11, 21          # N = 693 (not a multiple of 128)
    x2 = jax.random.normal(k3, (B2, C2, H2, W2), dtype=jnp.float32)
    y2 = jax.random.normal(k4, (B2, C2, H2, W2), dtype=jnp.float32)

    out2_mean = jax.block_until_ready(
        batch_l1_loss(x2, y2, reduction="mean", tile_cols=256))  # 3 N-tiles,
    # last one masked under pl.when; also exercises >=2 batch blocks (tb=8).
    out2_none = jax.block_until_ready(batch_l1_loss(x2, y2, reduction="none"))

    ref2_none = jnp.abs(x2 - y2)
    ref2_mean = jnp.mean(ref2_none, axis=(1, 2, 3))
    assert jnp.allclose(out2_mean, ref2_mean, rtol=1e-5, atol=1e-5)
    assert jnp.allclose(out2_none, ref2_none, rtol=1e-6, atol=1e-6)

    # --- Test 3: bf16 inputs (bf16-native elementwise, f32 accumulation) ---
    xb = x2.astype(jnp.bfloat16)
    yb = y2.astype(jnp.bfloat16)
    outb = jax.block_until_ready(batch_l1_loss(xb, yb, reduction="mean"))
    refb = jnp.mean(jnp.abs(xb.astype(jnp.float32) - yb.astype(jnp.float32)),
                    axis=(1, 2, 3))
    assert outb.dtype == jnp.bfloat16
    assert jnp.allclose(outb.astype(jnp.float32), refb, rtol=2e-2, atol=2e-2)

    print("KERNEL_OK")
</pallas_src>

<mosaic_0001>
module attributes {stable_mosaic.version = 11 : i64} {
  func.func @_l1_reduce_kernel(%arg0: i32, %arg1: i32, %arg2: memref<2x1024xf32, #tpu.memory_space<vmem>>, %arg3: memref<2x1024xf32, #tpu.memory_space<vmem>>, %arg4: memref<2x1xf32, #tpu.memory_space<vmem>>) attributes {dimension_semantics = [#tpu.dimension_semantics<parallel>, #tpu.dimension_semantics<arbitrary>], iteration_bounds = array<i64: 1, 1>, scalar_prefetch = 0 : i64, scratch_operands = 0 : i64, tpu.core_type = #tpu.core_type<tc>, window_params = [{transform_indices = @transform_0, window_bounds = array<i64: 2, 1024>}, {transform_indices = @transform_1, window_bounds = array<i64: 2, 1024>}, {transform_indices = @transform_2, window_bounds = array<i64: 2, 1>}]} {
    %c0_i32 = arith.constant 0 : i32
    %0 = arith.cmpi eq, %arg1, %c0_i32 : i32
    %1 = arith.extui %0 : i1 to i32
    %c0_i32_0 = arith.constant 0 : i32
    %2 = arith.cmpi ne, %1, %c0_i32_0 : i32
    scf.if %2 {
      %cst_10 = arith.constant 0.000000e+00 : f32
      %15 = vector.broadcast %cst_10 : f32 to vector<2x1xf32>
      %c0_11 = arith.constant 0 : index
      %c0_12 = arith.constant 0 : index
      %16 = vector.load %arg4[%c0_11, %c0_12] : memref<2x1xf32, #tpu.memory_space<vmem>>, vector<2x1xf32>
      tpu.vector_store %arg4[%c0_11, %c0_12], %15 {strides = array<i32>} : memref<2x1xf32, #tpu.memory_space<vmem>>, vector<2x1xf32>,
    } else {
    }
    %c0 = arith.constant 0 : index
    %c0_1 = arith.constant 0 : index
    %3 = vector.load %arg2[%c0, %c0_1] : memref<2x1024xf32, #tpu.memory_space<vmem>>, vector<2x1024xf32>
    %c0_2 = arith.constant 0 : index
    %c0_3 = arith.constant 0 : index
    %4 = vector.load %arg3[%c0_2, %c0_3] : memref<2x1024xf32, #tpu.memory_space<vmem>>, vector<2x1024xf32>
    %5 = arith.subf %3, %4 : vector<2x1024xf32>
    %6 = math.absf %5 : vector<2x1024xf32>
    %c0_4 = arith.constant 0 : index
    %c0_5 = arith.constant 0 : index
    %7 = vector.load %arg4[%c0_4, %c0_5] : memref<2x1xf32, #tpu.memory_space<vmem>>, vector<2x1xf32>
    %cst = arith.constant dense<0.000000e+00> : vector<2xf32>
    %8 = vector.multi_reduction <add>, %6, %cst [1] : vector<2x1024xf32> to vector<2xf32>
    %9 = vector.shape_cast %8 : vector<2xf32> to vector<2x1xf32>
    %10 = arith.addf %7, %9 : vector<2x1xf32>
    %c0_6 = arith.constant 0 : index
    %c0_7 = arith.constant 0 : index
    %11 = vector.load %arg4[%c0_6, %c0_7] : memref<2x1xf32, #tpu.memory_space<vmem>>, vector<2x1xf32>
    tpu.vector_store %arg4[%c0_6, %c0_7], %10 {strides = array<i32>} : memref<2x1xf32, #tpu.memory_space<vmem>>, vector<2x1xf32>,
    %c0_i32_8 = arith.constant 0 : i32
    %12 = arith.cmpi eq, %arg1, %c0_i32_8 : i32
    %13 = arith.extui %12 : i1 to i32
    %c0_i32_9 = arith.constant 0 : i32
    %14 = arith.cmpi ne, %13, %c0_i32_9 : i32
    scf.if %14 {
      %c0_10 = arith.constant 0 : index
      %c0_11 = arith.constant 0 : index
      %15 = vector.load %arg4[%c0_10, %c0_11] : memref<2x1xf32, #tpu.memory_space<vmem>>, vector<2x1xf32>
      %cst_12 = arith.constant 9.765625E-4 : f32
      %16 = vector.broadcast %cst_12 : f32 to vector<2x1xf32>
      %17 = arith.mulf %15, %16 : vector<2x1xf32>
      %c0_13 = arith.constant 0 : index
      %c0_14 = arith.constant 0 : index
      %18 = vector.load %arg4[%c0_13, %c0_14] : memref<2x1xf32, #tpu.memory_space<vmem>>, vector<2x1xf32>
      tpu.vector_store %arg4[%c0_13, %c0_14], %17 {strides = array<i32>} : memref<2x1xf32, #tpu.memory_space<vmem>>, vector<2x1xf32>,
    } else {
    }
    return
  }
  func.func @transform_0(%arg0: i32, %arg1: i32) -> (i32, i32) {
    %c0_i32 = arith.constant 0 : i32
    return %arg0, %arg1 : i32, i32
  }
  func.func @transform_1(%arg0: i32, %arg1: i32) -> (i32, i32) {
    %c0_i32 = arith.constant 0 : i32
    return %arg0, %arg1 : i32, i32
  }
  func.func @transform_2(%arg0: i32, %arg1: i32) -> (i32, i32) {
    %c0_i32 = arith.constant 0 : i32
    %c0_i32_0 = arith.constant 0 : i32
    return %arg0, %c0_i32 : i32, i32
  }
}

</mosaic_0001>

<bundles_post_ra>
// kernel: tpu_custom_call.1
= control target key start
LH: loop header
LB: loop body
LE: loop exit
PB: predicated region body
PF: predicated region fallthrough
CT: control target
= control target key end

     0   :  { %7 = vsyncpa [#allocation3], 0  ;;  %s226_s0 = inlined_call_operand.hbm [shape: f32[2,1024], index: 0, kind: input, shape index: {}]   ;;  %s227_s1 = inlined_call_operand.hbm [shape: f32[2,1024], index: 1, kind: input, shape index: {}]   ;;  %s228_s2 = inlined_call_operand.vmem [shape: f32[2,1], index: 2, kind: output, shape index: {}]  }
   0x1   :  { %8 = vsyncpa [#allocation5], 0  ;;  %s175_s9 = smov [#allocation2]   ;;  %s176_s11 = smov [#allocation4]  }
   0x2   :  { %s15_s10 = sshll.u32 %s175_s9, 4  ;;  %s25_s12 = sshll.u32 %s176_s11, 4  ;;  %s16_s10 = int_to_ptr.vmem [resolvable:$true] %s15_s10  ;;  %s26_s12 = int_to_ptr.vmem [resolvable:$true] %s25_s12 }
   0x3   :  { %s139_s13 = scalar_lea.vmem %s16_s10, 256  ;;  %p144_p1 = scmp.lt.s32.totalorder %s16_s10, %s16_s10 }
   0x4   :  { %p140_p0 = scmp.ne.s32.totalorder %s16_s10, %s139_s13  ;;  %p145_p2 = scmp.lt.s32.totalorder %s139_s13, %s139_s13 }
   0x6   :  { %p146_p3 = por %p145_p2, %p144_p1 }
   0x8   :  { %p147_p4 = pnand %p146_p3, %p140_p0 }
   0xa   :  { %150 = shalt.err (!%p147_p4)
}
   0xb   :  { %18 = dma.hbm_to_vmem [thread:$0]  %s226_s0, 256, %s16_s10, [#allocation3]  }
   0xc   :  { %s159_s16 = scalar_lea.vmem %s26_s12, 256  ;;  %p164_p6 = scmp.lt.s32.totalorder %s26_s12, %s26_s12 }
   0xd   :  { %p160_p5 = scmp.ne.s32.totalorder %s26_s12, %s159_s16  ;;  %p165_p7 = scmp.lt.s32.totalorder %s159_s16, %s159_s16 }
   0xf   :  { %p166_p8 = por %p165_p7, %p164_p6 }
  0x11   :  { %p167_p9 = pnand %p166_p8, %p160_p5 }
  0x13   :  { %170 = shalt.err (!%p167_p9)
}
  0x14   :  { %28 = dma.hbm_to_vmem [thread:$0]  %s227_s1, 256, %s26_s12, [#allocation5]  }
  0x15   :  { %171 = dma.done.wait [#allocation3], 256  }
  0x16   :  { %172 = vsyncadd [#allocation3], 4294967040 }
  0x17   :  { %173 = dma.done.wait [#allocation5], 256  }
  0x18   :  { %174 = vsyncadd [#allocation5], 4294967040  ;;  %v56_v0 = vlaneseq  ;;  %vm39_vm0 = vcmask 1024   ;;  %v177_v1 = vmov 1983009808   ;;  %v178_v3 = vmov 0.0  }
  0x19   :  { %v54_v2 = vunpack.c.l.s4 %v177_v1  ;;  %40 = vst.msk [vmem:[%s228_s2] sm:$0x3] %vm39_vm0, %v178_v3  ;;  %v41_v6 = vld [vmem:[#allocation2] sm:$0xff]  ;;  %v42_v7 = vld [vmem:[#allocation2 + $0x8] sm:$0xff]  ;;  %v43_v8 = vld [vmem:[#allocation4] sm:$0xff]  ;;  %vm94_vm1 = vcmask 1041408  }
  0x1a   :  { %v57_v5 = vshrl.u32 %v56_v0, 7  ;;  %v44_v9 = vld [vmem:[#allocation4 + $0x8] sm:$0xff]  ;;  %v45_v10 = vsub.f32 %v41_v6, %v43_v8 }
  0x1b   :  { %v55_v4 = vunpack.c.0.s8 %v54_v2  ;;  %v46_v12 = vsub.f32 %v42_v7, %v44_v9 }
  0x1c   :  { %v47_v13 = vand.u32 2147483647, %v45_v10 }
  0x1d   :  { %v58_v11 = vsub.s32 %v55_v4, %v57_v5  ;;  %v48_v14 = vand.u32 2147483647, %v46_v12 }
  0x1e   :  { %v52_v15 = vcombine.high %v47_v13, %v47_v13 }
  0x1f   :  { %v59_v16 = vrot.slane %v47_v13, %v58_v11  ;;  %v69_v17 = vcombine.high %v48_v14, %v48_v14  ;;  %v76_v20 = vrot.slane %v48_v14, %v58_v11 }
  0x20   :  { %v66_v18 = vrot.slane %v52_v15, %v58_v11  ;;  %v49_v40 = vld [vmem:[%s228_s2] sm:$0x3] }
  0x21   :  { %v67_v19 = vcombine.high %v59_v16, %v59_v16  ;;  %v95_v21 = vsel %vm94_vm1, %v59_v16, 0.0  ;;  %v83_v26 = vrot.slane %v69_v17, %v58_v11  ;;  %v84_v27 = vcombine.high %v76_v20, %v76_v20 }
  0x22   :  { %v68_v22 = vcombine.high %v66_v18, %v66_v18  ;;  %v98_v24 = vsel %vm94_vm1, %v66_v18, 0.0  ;;  %v102_v30 = vsel %vm94_vm1, %v76_v20, 0.0 }
  0x23   :  { %v96_v23 = vsel %vm94_vm1, %v67_v19, 0.0  ;;  %v85_v32 = vcombine.high %v83_v26, %v83_v26  ;;  %v104_v33 = vsel %vm94_vm1, %v84_v27, 0.0  ;;  %v106_v35 = vsel %vm94_vm1, %v83_v26, 0.0 }
  0x24   :  { %v97_v25 = vadd.f32 %v96_v23, %v95_v21  ;;  %v100_v28 = vsel %vm94_vm1, %v68_v22, 0.0 }
  0x25   :  { %v108_v37 = vsel %vm94_vm1, %v85_v32, 0.0 }
  0x26   :  { %v99_v29 = vadd.f32 %v98_v24, %v97_v25 }
  0x28   :  { %v101_v31 = vadd.f32 %v100_v28, %v99_v29 }
  0x2a   :  { %v103_v34 = vadd.f32 %v102_v30, %v101_v31 }
  0x2c   :  { %v105_v36 = vadd.f32 %v104_v33, %v103_v34 }
  0x2e   :  { %v107_v38 = vadd.f32 %v106_v35, %v105_v36 }
  0x30   :  { %v109_v39 = vadd.f32 %v108_v37, %v107_v38 }
  0x32   :  { %110 = vadd.xlane.f32.xlu0 %v109_v39 }
  0xbb   :  { %v111_v41 = vpop.xlane.xlu0 %110 }
  0xbc   :  { %v112_v42 = vadd.f32 %v111_v41, %v49_v40 }
  0xbe   :  { %114 = vst.msk [vmem:[%s228_s2] sm:$0x3] %vm39_vm0, %v112_v42 }
  0xc5   :  { %v118_v43 = vld [vmem:[%s228_s2] sm:$0x3] }
  0xc6   :  { %v119_v44 = vmul.f32 0.0009765625, %v118_v43 }
  0xc8   :  { %120 = vst.msk [vmem:[%s228_s2] sm:$0x3] %vm39_vm0, %v119_v44 }
  0xc9   :  { %125 = vsyncpa [#allocation3], 1 }
  0xca   :  { %126 = vsyncpa [#allocation5], 1 }

</bundles_post_ra>
